<compile_context>
chip_gen: v5e
topology: v5e:2x2
jax: 0.10.0
libtpu: 0.0.40
codegen_flags: <defaults>
</compile_context>

<pallas_src>
import functools

import jax
import jax.numpy as jnp
from jax.experimental import pallas as pl
from jax.experimental.pallas import tpu as pltpu


def _layernorm(x, g, b, eps=1e-5):
    x = x.astype(jnp.float32)
    mu = jnp.mean(x, axis=-1, keepdims=True)
    xc = x - mu
    var = jnp.mean(xc * xc, axis=-1, keepdims=True)
    return xc * jax.lax.rsqrt(var + eps) * g + b


def _vmem_limit_bytes():
    # Generation-aware scoped-VMEM limit: leave ~12% headroom under the
    # physical per-core capacity (64 MiB on v7x) and never request >100 MiB.
    try:
        cap = int(pltpu.get_tpu_info().vmem_capacity_bytes)
    except Exception:
        cap = 64 * 1024 * 1024
    if cap < 16 * 1024 * 1024:
        cap = 64 * 1024 * 1024
    return int(min(cap - cap // 8, 100 * 1024 * 1024))


# -------------------- stage 1: patch embed + cls/pos + ln_pre ---------------
def embed_kernel(tok_ref, wpatch_ref, clspos_ref, g_ref, b_ref, out_ref):
    t = jnp.dot(tok_ref[...], wpatch_ref[...],
                preferred_element_type=jnp.float32)          # (T, C) f32
    t = t + clspos_ref[...]
    out_ref[...] = _layernorm(t, g_ref[...], b_ref[...])


# -------------------- stage 2: residual blocks + ln_post + proj -------------
def vit_blocks_kernel(x0_ref,
                      wqkv_ref, bqkv_ref, wo_ref, bo_ref,
                      ln1g_ref, ln1b_ref, ln2g_ref, ln2b_ref,
                      wfc_ref, bfc_ref, wpr_ref, bpr_ref,
                      lnpost_g_ref, lnpost_b_ref, proj_ref,
                      out_ref, x_scr, attn_scr,
                      *, num_heads, head_dim, b_tile, l_pad, l_valid):
    layer = pl.program_id(1)
    n_layers = pl.num_programs(1)
    c = num_heads * head_dim
    t_rows = b_tile * l_pad
    scale = head_dim ** -0.5

    @pl.when(layer == 0)
    def _():
        x_scr[...] = x0_ref[...]        # load post-ln_pre activations once

    x = x_scr[...]                      # (T, C) f32 residual stream

    # ---------------- multi-head self-attention (pre-LN) ----------------
    h = _layernorm(x, ln1g_ref[0], ln1b_ref[0]).astype(jnp.bfloat16)
    qkv = jnp.dot(h, wqkv_ref[0],
                  preferred_element_type=jnp.float32) + bqkv_ref[0]
    q = (qkv[:, :c] * scale).reshape(b_tile, l_pad, c).astype(jnp.bfloat16)
    k = qkv[:, c:2 * c].reshape(b_tile, l_pad, c).astype(jnp.bfloat16)
    v = qkv[:, 2 * c:].reshape(b_tile, l_pad, c).astype(jnp.bfloat16)

    # Only padded key columns need masking (generated in-kernel, no DMA);
    # padded query rows are isolated junk that is never read at the output.
    if l_valid < l_pad:
        col = jax.lax.broadcasted_iota(jnp.int32, (l_pad, l_pad), 1)
        kmask = jnp.where(col < l_valid, 0.0, -1e30).astype(jnp.float32)
    else:
        kmask = None

    for hh in range(num_heads):          # static unroll over heads
        s0 = hh * head_dim
        qh = q[:, :, s0:s0 + head_dim]
        kh = k[:, :, s0:s0 + head_dim]
        vh = v[:, :, s0:s0 + head_dim]
        logits = jnp.einsum('bqd,bkd->bqk', qh, kh,
                            preferred_element_type=jnp.float32)  # (b, L, L)
        if kmask is not None:
            logits = logits + kmask[None]
        m = jnp.max(logits, axis=-1, keepdims=True)
        p = jnp.exp(logits - m)
        p = p * pl.reciprocal(jnp.sum(p, axis=-1, keepdims=True), approx=True)
        oh = jnp.einsum('bqk,bkd->bqd', p.astype(jnp.bfloat16), vh,
                        preferred_element_type=jnp.float32)       # (b, L, hd)
        # write this head into its lane slice; single fused out-proj below
        attn_scr[:, s0:s0 + head_dim] = oh.reshape(t_rows, head_dim)

    attn = jnp.dot(attn_scr[...].astype(jnp.bfloat16), wo_ref[0],
                   preferred_element_type=jnp.float32)            # (T, C)
    x = x + attn + bo_ref[0]

    # -------------------- MLP: c_fc -> QuickGELU -> c_proj --------------
    # TODO(synk): row-tile this over T and stream wfc/wpr for production sizes.
    h = _layernorm(x, ln2g_ref[0], ln2b_ref[0]).astype(jnp.bfloat16)
    h = jnp.dot(h, wfc_ref[0], preferred_element_type=jnp.float32) + bfc_ref[0]
    h = (h * jax.nn.sigmoid(1.702 * h)).astype(jnp.bfloat16)
    h = jnp.dot(h, wpr_ref[0], preferred_element_type=jnp.float32) + bpr_ref[0]
    x = x + h
    x_scr[...] = x

    # -------- last layer: class tokens -> ln_post -> output projection --
    @pl.when(layer == n_layers - 1)
    def _():
        row = jax.lax.broadcasted_iota(jnp.int32, (b_tile, t_rows), 0)
        col = jax.lax.broadcasted_iota(jnp.int32, (b_tile, t_rows), 1)
        sel = (col == row * l_pad).astype(jnp.float32)    # in-kernel one-hot
        cls = jnp.dot(sel, x, preferred_element_type=jnp.float32)  # (b, C)
        cls = _layernorm(cls, lnpost_g_ref[...], lnpost_b_ref[...])
        out = jnp.dot(cls.astype(jnp.bfloat16), proj_ref[...],
                      preferred_element_type=jnp.float32)
        out_ref[...] = out.astype(out_ref.dtype)


def visual_transformer(x_img, params, *, patch_size, num_heads):
    n, cin, img_h, img_w = x_img.shape
    gh, gw = img_h // patch_size, img_w // patch_size
    hw = gh * gw
    l_seq = hw + 1
    conv_w = params["conv_w"]                          # (width, cin, p, p)
    width = conv_w.shape[0]
    out_dim = params["proj"].shape[1]
    num_layers = len(params["layers"])
    p_dim = cin * patch_size * patch_size
    assert width % num_heads == 0, "width must divide num_heads"
    head_dim = width // num_heads

    # pad L to a sublane multiple so per-sample reshapes are layout-clean
    l_pad = ((l_seq + 7) // 8) * 8

    # several samples per grid step so projections/MLP stay big MXU matmuls
    # and per-layer weight streaming is amortized across the tile
    if n % 16 == 0:
        b_tile = 16
    elif n % 8 == 0:
        b_tile = 8
    else:
        b_tile = n
    t_rows = b_tile * l_pad
    vmem_limit = _vmem_limit_bytes()
    w4 = 4 * width

    # ---------------- layout glue (pure reshapes, once per call) ------------
    patches = x_img.reshape(n, cin, gh, patch_size, gw, patch_size)
    patches = patches.transpose(0, 2, 4, 1, 3, 5).reshape(n, hw, p_dim)
    tokens = jnp.zeros((n, l_pad, p_dim), jnp.float32)
    tokens = tokens.at[:, 1:l_seq, :].set(patches)     # row 0 = class slot
    tokens = tokens.reshape(n * l_pad, p_dim).astype(jnp.bfloat16)

    wpatch = conv_w.reshape(width, p_dim).T.astype(jnp.bfloat16)   # (P, C)
    cls_pos = params["pos"].at[0].add(params["class_emb"])         # (L, C)
    cls_pos_pad = jnp.zeros((l_pad, width), jnp.float32).at[:l_seq].set(cls_pos)
    cls_pos_tile = jnp.tile(cls_pos_pad, (b_tile, 1))              # (T, C)

    lnpre_g = params["ln_pre_g"].reshape(1, width).astype(jnp.float32)
    lnpre_b = params["ln_pre_b"].reshape(1, width).astype(jnp.float32)
    lnpost_g = params["ln_post_g"].reshape(1, width).astype(jnp.float32)
    lnpost_b = params["ln_post_b"].reshape(1, width).astype(jnp.float32)
    proj = params["proj"].astype(jnp.bfloat16)

    def stack(name):
        return jnp.stack([lp[name] for lp in params["layers"]])

    wqkv = jnp.transpose(stack("w_in"), (0, 2, 1)).astype(jnp.bfloat16)
    bqkv = stack("b_in")[:, None, :].astype(jnp.float32)
    wo = jnp.transpose(stack("w_out"), (0, 2, 1)).astype(jnp.bfloat16)
    bo = stack("b_out")[:, None, :].astype(jnp.float32)
    ln1g = stack("ln1_g")[:, None, :].astype(jnp.float32)
    ln1b = stack("ln1_b")[:, None, :].astype(jnp.float32)
    ln2g = stack("ln2_g")[:, None, :].astype(jnp.float32)
    ln2b = stack("ln2_b")[:, None, :].astype(jnp.float32)
    wfc = jnp.transpose(stack("w_fc"), (0, 2, 1)).astype(jnp.bfloat16)
    bfc = stack("b_fc")[:, None, :].astype(jnp.float32)
    wpr = jnp.transpose(stack("w_pr"), (0, 2, 1)).astype(jnp.bfloat16)
    bpr = stack("b_pr")[:, None, :].astype(jnp.float32)

    # ---- stage 1: prologue as its own small pallas_call (frees VMEM in the
    #      layer loop; the extra HBM round-trip of (T,C) f32 is tiny) ---------
    x0 = pl.pallas_call(
        embed_kernel,
        out_shape=jax.ShapeDtypeStruct((n * l_pad, width), jnp.float32),
        grid_spec=pltpu.PrefetchScalarGridSpec(
            num_scalar_prefetch=0,
            grid=(n // b_tile,),
            in_specs=[
                pl.BlockSpec((t_rows, p_dim), lambda b: (b, 0)),   # tokens
                pl.BlockSpec((p_dim, width), lambda b: (0, 0)),    # patch W
                pl.BlockSpec((t_rows, width), lambda b: (0, 0)),   # cls+pos
                pl.BlockSpec((1, width), lambda b: (0, 0)),        # ln_pre g
                pl.BlockSpec((1, width), lambda b: (0, 0)),        # ln_pre b
            ],
            out_specs=pl.BlockSpec((t_rows, width), lambda b: (b, 0)),
        ),
        compiler_params=pltpu.CompilerParams(
            dimension_semantics=("parallel",),
            vmem_limit_bytes=vmem_limit),
    )(tokens, wpatch, cls_pos_tile, lnpre_g, lnpre_b)

    # ---- stage 2: all residual blocks + ln_post + projection, fused --------
    kernel = functools.partial(vit_blocks_kernel, num_heads=num_heads,
                               head_dim=head_dim, b_tile=b_tile,
                               l_pad=l_pad, l_valid=l_seq)
    per_layer3 = lambda b, l: (l, 0, 0)
    shared2 = lambda b, l: (0, 0)

    out = pl.pallas_call(
        kernel,
        out_shape=jax.ShapeDtypeStruct((n, out_dim), x_img.dtype),
        grid_spec=pltpu.PrefetchScalarGridSpec(
            num_scalar_prefetch=0,
            grid=(n // b_tile, num_layers),
            in_specs=[
                pl.BlockSpec((t_rows, width), lambda b, l: (b, 0)),   # x0
                pl.BlockSpec((1, width, 3 * width), per_layer3),      # Wqkv
                pl.BlockSpec((1, 1, 3 * width), per_layer3),          # bqkv
                pl.BlockSpec((1, width, width), per_layer3),          # Wout
                pl.BlockSpec((1, 1, width), per_layer3),              # bout
                pl.BlockSpec((1, 1, width), per_layer3),              # ln1 g
                pl.BlockSpec((1, 1, width), per_layer3),              # ln1 b
                pl.BlockSpec((1, 1, width), per_layer3),              # ln2 g
                pl.BlockSpec((1, 1, width), per_layer3),              # ln2 b
                pl.BlockSpec((1, width, w4), per_layer3),             # W c_fc
                pl.BlockSpec((1, 1, w4), per_layer3),                 # b c_fc
                pl.BlockSpec((1, w4, width), per_layer3),             # W c_proj
                pl.BlockSpec((1, 1, width), per_layer3),              # b c_proj
                pl.BlockSpec((1, width), shared2),                    # ln_post g
                pl.BlockSpec((1, width), shared2),                    # ln_post b
                pl.BlockSpec((width, out_dim), shared2),              # proj
            ],
            out_specs=pl.BlockSpec((b_tile, out_dim), lambda b, l: (b, 0)),
            scratch_shapes=[pltpu.VMEM((t_rows, width), jnp.float32),   # x
                            pltpu.VMEM((t_rows, width), jnp.float32)],  # attn
        ),
        compiler_params=pltpu.CompilerParams(
            dimension_semantics=("parallel", "arbitrary"),
            vmem_limit_bytes=vmem_limit),
    )(x0, wqkv, bqkv, wo, bo, ln1g, ln1b, ln2g, ln2b,
      wfc, bfc, wpr, bpr, lnpost_g, lnpost_b, proj)
    return out


# ---------------- pure-JAX reference (PyTorch forward replica) --------------
def _layernorm_ref(x, g, b, eps=1e-5):
    mu = jnp.mean(x, axis=-1, keepdims=True)
    var = jnp.mean((x - mu) ** 2, axis=-1, keepdims=True)
    return (x - mu) * jax.lax.rsqrt(var + eps) * g + b


def reference(x_img, params, *, patch_size, num_heads):
    n, cin, img_h, img_w = x_img.shape
    gh, gw = img_h // patch_size, img_w // patch_size
    hw = gh * gw
    conv_w = params["conv_w"]
    width = conv_w.shape[0]
    hd = width // num_heads

    patches = x_img.reshape(n, cin, gh, patch_size, gw, patch_size)
    patches = patches.transpose(0, 2, 4, 1, 3, 5).reshape(n, hw, -1)
    x = patches @ conv_w.reshape(width, -1).T                    # conv1
    cls = jnp.broadcast_to(params["class_emb"], (n, 1, width))
    x = jnp.concatenate([cls, x], axis=1) + params["pos"][None]
    x = _layernorm_ref(x, params["ln_pre_g"], params["ln_pre_b"])
    for lp in params["layers"]:
        h = _layernorm_ref(x, lp["ln1_g"], lp["ln1_b"])
        qkv = h @ lp["w_in"].T + lp["b_in"]
        q, k, v = jnp.split(qkv, 3, axis=-1)
        q = q.reshape(n, -1, num_heads, hd) * hd ** -0.5
        k = k.reshape(n, -1, num_heads, hd)
        v = v.reshape(n, -1, num_heads, hd)
        logits = jnp.einsum("bqhd,bkhd->bhqk", q, k)
        p = jax.nn.softmax(logits, axis=-1)
        a = jnp.einsum("bhqk,bkhd->bqhd", p, v).reshape(n, -1, width)
        x = x + a @ lp["w_out"].T + lp["b_out"]
        h = _layernorm_ref(x, lp["ln2_g"], lp["ln2_b"])
        h = h @ lp["w_fc"].T + lp["b_fc"]
        h = h * jax.nn.sigmoid(1.702 * h)
        x = x + h @ lp["w_pr"].T + lp["b_pr"]
    cls_tok = _layernorm_ref(x[:, 0, :], params["ln_post_g"],
                             params["ln_post_b"])
    return cls_tok @ params["proj"]


if __name__ == "__main__":
    N = 2
    INPUT_RES = 16
    PATCH = 4
    WIDTH = 32
    LAYERS = 2
    HEADS = 4
    OUT_DIM = 16
    L = (INPUT_RES // PATCH) ** 2 + 1

    key = jax.random.PRNGKey(0)
    keys = iter(jax.random.split(key, 64))

    def nrm(shape, s):
        return jax.random.normal(next(keys), shape, jnp.float32) * s

    scale = WIDTH ** -0.5
    params = {
        "conv_w": nrm((WIDTH, 3, PATCH, PATCH), 0.05),
        "class_emb": nrm((WIDTH,), scale),
        "pos": nrm((L, WIDTH), scale),
        "ln_pre_g": jnp.ones((WIDTH,), jnp.float32),
        "ln_pre_b": jnp.zeros((WIDTH,), jnp.float32),
        "ln_post_g": jnp.ones((WIDTH,), jnp.float32),
        "ln_post_b": jnp.zeros((WIDTH,), jnp.float32),
        "proj": nrm((WIDTH, OUT_DIM), scale),
        "layers": [],
    }
    for _ in range(LAYERS):
        params["layers"].append({
            "w_in": nrm((3 * WIDTH, WIDTH), 0.05),
            "b_in": nrm((3 * WIDTH,), 0.02),
            "w_out": nrm((WIDTH, WIDTH), 0.05),
            "b_out": nrm((WIDTH,), 0.02),
            "ln1_g": jnp.ones((WIDTH,), jnp.float32),
            "ln1_b": jnp.zeros((WIDTH,), jnp.float32),
            "ln2_g": jnp.ones((WIDTH,), jnp.float32),
            "ln2_b": jnp.zeros((WIDTH,), jnp.float32),
            "w_fc": nrm((4 * WIDTH, WIDTH), 0.05),
            "b_fc": nrm((4 * WIDTH,), 0.02),
            "w_pr": nrm((WIDTH, 4 * WIDTH), 0.05),
            "b_pr": nrm((WIDTH,), 0.02),
        })

    x = jax.random.normal(next(keys), (N, 3, INPUT_RES, INPUT_RES),
                          jnp.float32)

    out = jax.block_until_ready(
        visual_transformer(x, params, patch_size=PATCH, num_heads=HEADS))
    ref = jax.block_until_ready(
        reference(x, params, patch_size=PATCH, num_heads=HEADS))

    if out.shape != (N, OUT_DIM):
        raise AssertionError(f"bad output shape {out.shape}")
    # bf16 matmul inputs (f32 accumulation) vs pure-f32 reference -> 3e-2 tol
    if not jnp.allclose(out, ref, atol=3e-2, rtol=3e-2):
        raise AssertionError(
            f"mismatch: max abs err {jnp.max(jnp.abs(out - ref))}")

    print("KERNEL_OK")
</pallas_src>

<mosaic_0001>
module attributes {stable_mosaic.version = 11 : i64} {
  func.func @embed_kernel(%arg0: i32, %arg1: memref<48x48xbf16, #tpu.memory_space<vmem>>, %arg2: memref<48x32xbf16, #tpu.memory_space<vmem>>, %arg3: memref<48x32xf32, #tpu.memory_space<vmem>>, %arg4: memref<1x32xf32, #tpu.memory_space<vmem>>, %arg5: memref<1x32xf32, #tpu.memory_space<vmem>>, %arg6: memref<48x32xf32, #tpu.memory_space<vmem>>) attributes {dimension_semantics = [#tpu.dimension_semantics<parallel>], iteration_bounds = array<i64: 1>, scalar_prefetch = 0 : i64, scratch_operands = 0 : i64, tpu.core_type = #tpu.core_type<tc>, window_params = [{transform_indices = @transform_0, window_bounds = array<i64: 48, 48>}, {pipeline_mode = #tpu.pipeline_mode<synchronous>, transform_indices = @transform_1, window_bounds = array<i64: 48, 32>}, {pipeline_mode = #tpu.pipeline_mode<synchronous>, transform_indices = @transform_2, window_bounds = array<i64: 48, 32>}, {pipeline_mode = #tpu.pipeline_mode<synchronous>, transform_indices = @transform_3, window_bounds = array<i64: 1, 32>}, {pipeline_mode = #tpu.pipeline_mode<synchronous>, transform_indices = @transform_4, window_bounds = array<i64: 1, 32>}, {transform_indices = @transform_5, window_bounds = array<i64: 48, 32>}]} {
    %c0 = arith.constant 0 : index
    %c0_0 = arith.constant 0 : index
    %0 = vector.load %arg1[%c0, %c0_0] : memref<48x48xbf16, #tpu.memory_space<vmem>>, vector<48x48xbf16>
    %c0_1 = arith.constant 0 : index
    %c0_2 = arith.constant 0 : index
    %1 = vector.load %arg2[%c0_1, %c0_2] : memref<48x32xbf16, #tpu.memory_space<vmem>>, vector<48x32xbf16>
    %cst = arith.constant dense<0.000000e+00> : vector<48x32xf32>
    %2 = tpu.matmul %0, %1, %cst {dimension_numbers = #tpu.dot_dimension_numbers<[1], [0], [0], [1], [0, 0, 1, 1], [], []>} : vector<48x48xbf16>, vector<48x32xbf16>, vector<48x32xf32> -> vector<48x32xf32>
    %c0_3 = arith.constant 0 : index
    %c0_4 = arith.constant 0 : index
    %3 = vector.load %arg3[%c0_3, %c0_4] : memref<48x32xf32, #tpu.memory_space<vmem>>, vector<48x32xf32>
    %4 = arith.addf %2, %3 : vector<48x32xf32>
    %c0_5 = arith.constant 0 : index
    %c0_6 = arith.constant 0 : index
    %5 = vector.load %arg4[%c0_5, %c0_6] : memref<1x32xf32, #tpu.memory_space<vmem>>, vector<1x32xf32>
    %c0_7 = arith.constant 0 : index
    %c0_8 = arith.constant 0 : index
    %6 = vector.load %arg5[%c0_7, %c0_8] : memref<1x32xf32, #tpu.memory_space<vmem>>, vector<1x32xf32>
    %cst_9 = arith.constant dense<0.000000e+00> : vector<48xf32>
    %7 = vector.multi_reduction <add>, %4, %cst_9 [1] : vector<48x32xf32> to vector<48xf32>
    %8 = vector.shape_cast %7 : vector<48xf32> to vector<48x1xf32>
    %cst_10 = arith.constant 3.200000e+01 : f32
    %9 = vector.broadcast %cst_10 : f32 to vector<48x1xf32>
    %10 = arith.divf %8, %9 : vector<48x1xf32>
    %11 = vector.broadcast %10 : vector<48x1xf32> to vector<48x32xf32>
    %12 = arith.subf %4, %11 : vector<48x32xf32>
    %13 = arith.mulf %12, %12 : vector<48x32xf32>
    %cst_11 = arith.constant dense<0.000000e+00> : vector<48xf32>
    %14 = vector.multi_reduction <add>, %13, %cst_11 [1] : vector<48x32xf32> to vector<48xf32>
    %15 = vector.shape_cast %14 : vector<48xf32> to vector<48x1xf32>
    %cst_12 = arith.constant 3.200000e+01 : f32
    %16 = vector.broadcast %cst_12 : f32 to vector<48x1xf32>
    %17 = arith.divf %15, %16 : vector<48x1xf32>
    %cst_13 = arith.constant 9.99999974E-6 : f32
    %18 = vector.broadcast %cst_13 : f32 to vector<48x1xf32>
    %19 = arith.addf %17, %18 : vector<48x1xf32>
    %20 = math.rsqrt %19 : vector<48x1xf32>
    %21 = vector.broadcast %20 : vector<48x1xf32> to vector<48x32xf32>
    %22 = arith.mulf %12, %21 : vector<48x32xf32>
    %23 = vector.broadcast %5 : vector<1x32xf32> to vector<48x32xf32>
    %24 = arith.mulf %22, %23 : vector<48x32xf32>
    %25 = vector.broadcast %6 : vector<1x32xf32> to vector<48x32xf32>
    %26 = arith.addf %24, %25 : vector<48x32xf32>
    %c0_14 = arith.constant 0 : index
    %c0_15 = arith.constant 0 : index
    %27 = vector.load %arg6[%c0_14, %c0_15] : memref<48x32xf32, #tpu.memory_space<vmem>>, vector<48x32xf32>
    tpu.vector_store %arg6[%c0_14, %c0_15], %26 {strides = array<i32>} : memref<48x32xf32, #tpu.memory_space<vmem>>, vector<48x32xf32>,
    return
  }
  func.func @transform_0(%arg0: i32) -> (i32, i32) {
    %c0_i32 = arith.constant 0 : i32
    %c0_i32_0 = arith.constant 0 : i32
    return %arg0, %c0_i32 : i32, i32
  }
  func.func @transform_1(%arg0: i32) -> (i32, i32) {
    %c0_i32 = arith.constant 0 : i32
    %c0_i32_0 = arith.constant 0 : i32
    %c0_i32_1 = arith.constant 0 : i32
    return %c0_i32, %c0_i32_0 : i32, i32
  }
  func.func @transform_2(%arg0: i32) -> (i32, i32) {
    %c0_i32 = arith.constant 0 : i32
    %c0_i32_0 = arith.constant 0 : i32
    %c0_i32_1 = arith.constant 0 : i32
    return %c0_i32, %c0_i32_0 : i32, i32
  }
  func.func @transform_3(%arg0: i32) -> (i32, i32) {
    %c0_i32 = arith.constant 0 : i32
    %c0_i32_0 = arith.constant 0 : i32
    %c0_i32_1 = arith.constant 0 : i32
    return %c0_i32, %c0_i32_0 : i32, i32
  }
  func.func @transform_4(%arg0: i32) -> (i32, i32) {
    %c0_i32 = arith.constant 0 : i32
    %c0_i32_0 = arith.constant 0 : i32
    %c0_i32_1 = arith.constant 0 : i32
    return %c0_i32, %c0_i32_0 : i32, i32
  }
  func.func @transform_5(%arg0: i32) -> (i32, i32) {
    %c0_i32 = arith.constant 0 : i32
    %c0_i32_0 = arith.constant 0 : i32
    return %arg0, %c0_i32 : i32, i32
  }
}

</mosaic_0001>

<bundles_post_ra>
// kernel: tpu_custom_call.1
= control target key start
LH: loop header
LB: loop body
LE: loop exit
PB: predicated region body
PF: predicated region fallthrough
CT: control target
= control target key end

     0   :  { %vm72_vm0 = vcmask 392192   ;;  %vm108_vm1 = vcmask 261120   ;;  %v332_v30 = vmov 32.0   ;;  %s508_s1 = inlined_call_operand.vmem [shape: bf16[48,32], index: 1, kind: input, shape index: {}]   ;;  %s509_s0 = inlined_call_operand.vmem [shape: bf16[48,48], index: 0, kind: input, shape index: {}]   ;;  %s510_s2 = inlined_call_operand.vmem [shape: f32[48,32], index: 2, kind: input, shape index: {}]   ;;  %s511_s3 = inlined_call_operand.vmem [shape: f32[1,32], index: 3, kind: input, shape index: {}]   ;;  %s512_s4 = inlined_call_operand.vmem [shape: f32[1,32], index: 4, kind: input, shape index: {}]   ;;  %s513_s5 = inlined_call_operand.vmem [shape: f32[48,32], index: 5, kind: output, shape index: {}]  }
   0x1   :  { %v308_v0 = vld [vmem:[%s508_s1 + $0x10] sm:$0xff]  ;;  %v307_v1 = vld [vmem:[%s508_s1 + $0x8] sm:$0xff]  ;;  %v306_v2 = vld [vmem:[%s508_s1] sm:$0xff]  ;;  %318 = vrcp.f32 %v332_v30 }
   0x2   :  { %87 = vmatpush.bf16.msra.mxu0 %v308_v0  ;;  %309 = vmatpush.bf16.msra.mxu1 %v308_v0  ;;  %v303_v3 = vld [vmem:[%s509_s0] sm:$0xff]  ;;  %v304_v4 = vld [vmem:[%s509_s0 + $0x8] sm:$0xff]  ;;  %v305_v5 = vld [vmem:[%s509_s0 + $0x10] sm:$0xff] }
   0x3   :  { %310 = vmatpush.bf16.msra.mxu2 %v308_v0  ;;  %v33_v6 = vld [vmem:[%s510_s2] sm:$0xff]  ;;  %v35_v7 = vld [vmem:[%s510_s2 + $0x10] sm:$0xff]  ;;  %v34_v15 = vld [vmem:[%s510_s2 + $0x8] sm:$0xff] }
   0x4   :  { %v37_v14 = vld [vmem:[%s510_s2 + $0x20] sm:$0xff]  ;;  %v36_v16 = vld [vmem:[%s510_s2 + $0x18] sm:$0xff]  ;;  %v38_v26 = vld [vmem:[%s510_s2 + $0x28] sm:$0xff] }
   0x6   :  { %88 = vmatpush.bf16.msra.mxu0 %v307_v1  ;;  %311 = vmatpush.bf16.msra.mxu1 %v307_v1 }
   0x7   :  { %312 = vmatpush.bf16.msra.mxu2 %v307_v1  ;;  %v319_v31 = vpop.eup %318 }
   0x8   :  { %v128_v32 = vmul.f32 32.0, %v319_v31  ;;  %vm132_vm2 = vweird.f32 %v319_v31 }
   0xa   :  { %89 = vmatpush.bf16.msra.mxu0 %v306_v2  ;;  %313 = vmatpush.bf16.msra.mxu1 %v306_v2  ;;  %v129_v33 = vsub.f32 1.0, %v128_v32 }
   0xb   :  { %314 = vmatpush.bf16.msra.mxu2 %v306_v2 }
   0xc   :  { %v130_v34 = vmul.f32 %v319_v31, %v129_v33 }
   0xd   :  { %300 = vmatmul.msk.bf16.vlgmr.msra.gmra.mxu0 %vm72_vm0, %v303_v3  ;;  %301 = vmatmul.msk.bf16.vlgmr.msra.gmra.mxu1 %vm72_vm0, %v304_v4 }
   0xe   :  { %302 = vmatmul.msk.bf16.vlgmr.msra.gmra.mxu2 %vm72_vm0, %v305_v5  ;;  %v131_v35 = vadd.f32 %v319_v31, %v130_v34 }
  0x10   :  { %v405_v36 = vsel %vm132_vm2, %v319_v31, %v131_v35  ;;  %v460_v35 = vld [vmem:[%s511_s3] ss:$0 sm:$0xff] }
  0x8a   :  { %v91_v8 = vpop.f32.mrf.mxu0  ;;  %v96_v9 = vpop.f32.mrf.mxu1 }
  0x8b   :  { %v92_v10 = vadd.f32 %v91_v8, %v33_v6  ;;  %v97_v11 = vadd.f32 %v96_v9, %v35_v7 }
  0x8d   :  { %v115_v12 = vsel %vm108_vm1, %v97_v11, 0.0  ;;  %v109_v13 = vsel %vm108_vm1, %v92_v10, 0.0 }
  0x8e   :  { %116 = vadd.xlane.f32.xlu1 %v115_v12  ;;  %110 = vadd.xlane.f32.xlu0 %v109_v13 }
  0x91   :  { %v101_v17 = vpop.f32.mrf.mxu2 }
  0x92   :  { %v102_v18 = vadd.f32 %v101_v17, %v37_v14  ;;  %v93_v19 = vpop.f32.mrf.mxu0  ;;  %v98_v20 = vpop.f32.mrf.mxu1 }
  0x93   :  { %v94_v21 = vadd.f32 %v93_v19, %v34_v15  ;;  %v99_v22 = vadd.f32 %v98_v20, %v36_v16 }
  0x94   :  { %v121_v23 = vsel %vm108_vm1, %v102_v18, 0.0 }
  0x95   :  { %122 = vadd.xlane.f32.xlu2 %v121_v23  ;;  %v118_v24 = vsel %vm108_vm1, %v99_v22, 0.0  ;;  %v112_v25 = vsel %vm108_vm1, %v94_v21, 0.0 }
  0x96   :  { %119 = vadd.xlane.f32.xlu1 %v118_v24  ;;  %113 = vadd.xlane.f32.xlu0 %v112_v25 }
  0x99   :  { %v103_v27 = vpop.f32.mrf.mxu2 }
  0x9a   :  { %v104_v28 = vadd.f32 %v103_v27, %v38_v26 }
  0x9c   :  { %v124_v29 = vsel %vm108_vm1, %v104_v28, 0.0 }
  0x9d   :  { %125 = vadd.xlane.f32.xlu2 %v124_v29 }
 0x101   :  { %v117_v37 = vpop.xlane.xlu1 %116  ;;  %v111_v38 = vpop.xlane.xlu0 %110 }
 0x102   :  { %v136_v39 = vmul.f32 %v405_v36, %v117_v37  ;;  %v134_v40 = vmul.f32 %v405_v36, %v111_v38 }
 0x104   :  { %v409_v41 = vsub.f32 %v97_v11, %v136_v39  ;;  %v411_v42 = vsub.f32 %v92_v10, %v134_v40  ;;  %v317_v40 = vld [vmem:[%s512_s4] ss:$0 sm:$0xff] }
 0x106   :  { %v148_v43 = vmul.f32 %v409_v41, %v409_v41  ;;  %v146_v44 = vmul.f32 %v411_v42, %v411_v42 }
 0x108   :  { %v123_v45 = vpop.xlane.xlu2 %122  ;;  %v158_v46 = vsel %vm108_vm1, %v148_v43, 0.0  ;;  %v152_v47 = vsel %vm108_vm1, %v146_v44, 0.0 }
 0x109   :  { %159 = vadd.xlane.f32.xlu2 %v158_v46  ;;  %v120_v48 = vpop.xlane.xlu1 %119  ;;  %153 = vadd.xlane.f32.xlu0 %v152_v47  ;;  %v114_v49 = vpop.xlane.xlu0 %113  ;;  %v138_v52 = vmul.f32 %v405_v36, %v123_v45 }
 0x10a   :  { %v137_v50 = vmul.f32 %v405_v36, %v120_v48  ;;  %v135_v51 = vmul.f32 %v405_v36, %v114_v49 }
 0x10b   :  { %v430_v57 = vsub.f32 %v102_v18, %v138_v52 }
 0x10c   :  { %v422_v53 = vsub.f32 %v99_v22, %v137_v50  ;;  %v424_v54 = vsub.f32 %v94_v21, %v135_v51 }
 0x10d   :  { %v150_v63 = vmul.f32 %v430_v57, %v430_v57 }
 0x10e   :  { %v149_v55 = vmul.f32 %v422_v53, %v422_v53  ;;  %v147_v56 = vmul.f32 %v424_v54, %v424_v54 }
 0x10f   :  { %v164_v2 = vsel %vm108_vm1, %v150_v63, 0.0 }
 0x110   :  { %v126_v58 = vpop.xlane.xlu2 %125  ;;  %v161_v59 = vsel %vm108_vm1, %v149_v55, 0.0  ;;  %v155_v60 = vsel %vm108_vm1, %v147_v56, 0.0 }
 0x111   :  { %v139_v61 = vmul.f32 %v405_v36, %v126_v58  ;;  %162 = vadd.xlane.f32.xlu0 %v161_v59  ;;  %156 = vadd.xlane.f32.xlu1 %v155_v60 }
 0x113   :  { %v435_v62 = vsub.f32 %v104_v28, %v139_v61 }
 0x115   :  { %v151_v0 = vmul.f32 %v435_v62, %v435_v62 }
 0x117   :  { %v167_v1 = vsel %vm108_vm1, %v151_v0, 0.0 }
 0x118   :  { %168 = vadd.xlane.f32.xlu2 %v167_v1 }
 0x119   :  { %165 = vadd.xlane.f32.xlu1 %v164_v2 }
 0x17c   :  { %v160_v3 = vpop.xlane.xlu2 %159  ;;  %v154_v4 = vpop.xlane.xlu0 %153 }
 0x17d   :  { %v172_v5 = vmul.f32 %v160_v3, %v405_v36  ;;  %v170_v6 = vmul.f32 %v154_v4, %v405_v36 }
 0x17f   :  { %v178_v7 = vadd.f32 1e-05, %v172_v5  ;;  %v176_v8 = vadd.f32 1e-05, %v170_v6 }
 0x181   :  { %320 = vrsqrt.f32 %v178_v7  ;;  %vm208_vm5 = vweird.f32 %v178_v7  ;;  %vm188_vm7 = vweird.f32 %v176_v8 }
 0x182   :  { %322 = vrsqrt.f32 %v176_v8 }
 0x184   :  { %v157_v9 = vpop.xlane.xlu1 %156  ;;  %v163_v10 = vpop.xlane.xlu0 %162 }
 0x185   :  { %v171_v11 = vmul.f32 %v157_v9, %v405_v36  ;;  %v173_v12 = vmul.f32 %v163_v10, %v405_v36 }
 0x187   :  { %v321_v13 = vpop.eup %320  ;;  %v177_v14 = vadd.f32 1e-05, %v171_v11  ;;  %v447_v15 = vadd.f32 1e-05, %v173_v12 }
 0x188   :  { %v323_v16 = vpop.eup %322  ;;  %v203_v17 = vmul.f32 %v321_v13, %v178_v7  ;;  %vm209_vm3 = vweird.f32 %v321_v13 }
 0x189   :  { %v183_v18 = vmul.f32 %v323_v16, %v176_v8  ;;  %324 = vrsqrt.f32 %v177_v14  ;;  %vm189_vm4 = vweird.f32 %v323_v16  ;;  %vm210_vm6 = vmor %vm208_vm5, %vm209_vm3  ;;  %vm198_vm11 = vweird.f32 %v177_v14 }
 0x18a   :  { %v204_v19 = vmul.f32 %v321_v13, %v203_v17  ;;  %326 = vrsqrt.f32 %v447_v15  ;;  %vm190_vm8 = vmor %vm188_vm7, %vm189_vm4  ;;  %vm218_vm13 = vweird.f32 %v447_v15 }
 0x18b   :  { %v184_v20 = vmul.f32 %v323_v16, %v183_v18  ;;  %v169_v21 = vpop.xlane.xlu2 %168 }
 0x18c   :  { %v205_v22 = vmul.f32 0.5, %v204_v19  ;;  %v175_v23 = vmul.f32 %v169_v21, %v405_v36  ;;  %v166_v24 = vpop.xlane.xlu1 %165 }
 0x18d   :  { %v185_v25 = vmul.f32 0.5, %v184_v20  ;;  %v174_v26 = vmul.f32 %v166_v24, %v405_v36 }
 0x18e   :  { %v206_v27 = vsub.f32 1.5, %v205_v22  ;;  %v452_v28 = vadd.f32 1e-05, %v175_v23 }
 0x18f   :  { %v325_v29 = vpop.eup %324  ;;  %v186_v30 = vsub.f32 1.5, %v185_v25  ;;  %v454_v31 = vadd.f32 1e-05, %v174_v26 }
 0x190   :  { %v327_v32 = vpop.eup %326  ;;  %v207_v33 = vmul.f32 %v321_v13, %v206_v27  ;;  %v193_v34 = vmul.f32 %v325_v29, %v177_v14  ;;  %328 = vrsqrt.f32 %v452_v28  ;;  %vm199_vm9 = vweird.f32 %v325_v29 }
 0x191   :  { %v187_v36 = vmul.f32 %v323_v16, %v186_v30  ;;  %v213_v37 = vmul.f32 %v327_v32, %v447_v15  ;;  %330 = vrsqrt.f32 %v454_v31  ;;  %vm219_vm10 = vweird.f32 %v327_v32  ;;  %vm200_vm12 = vmor %vm198_vm11, %vm199_vm9 }
 0x192   :  { %v211_v38 = vsel %vm210_vm6, %v321_v13, %v207_v33  ;;  %v194_v39 = vmul.f32 %v325_v29, %v193_v34  ;;  %vm220_vm14 = vmor %vm218_vm13, %vm219_vm10  ;;  %vm238_vm0 = vweird.f32 %v452_v28  ;;  %vm228_vm4 = vweird.f32 %v454_v31 }
 0x193   :  { %v244_v43 = vmul.f32 %v211_v38, %v409_v41  ;;  %v191_v44 = vsel %vm190_vm8, %v323_v16, %v187_v36  ;;  %v214_v45 = vmul.f32 %v327_v32, %v213_v37 }
 0x194   :  { %v242_v46 = vmul.f32 %v191_v44, %v411_v42  ;;  %v195_v47 = vmul.f32 0.5, %v194_v39 }
 0x195   :  { %v253_v48 = vmul.f32 %v460_v35, %v244_v43  ;;  %v215_v49 = vmul.f32 0.5, %v214_v45 }
 0x196   :  { %v329_v50 = vpop.eup %328  ;;  %v251_v51 = vmul.f32 %v460_v35, %v242_v46  ;;  %v196_v52 = vsub.f32 1.5, %v195_v47 }
 0x197   :  { %v262_v55 = vadd.f32 %v317_v40, %v253_v48  ;;  %v216_v56 = vsub.f32 1.5, %v215_v49  ;;  %v233_v58 = vmul.f32 %v329_v50, %v452_v28  ;;  %v331_v59 = vpop.eup %330  ;;  %vm239_vm15 = vweird.f32 %v329_v50 }
 0x198   :  { %v260_v41 = vadd.f32 %v317_v40, %v251_v51  ;;  %v197_v60 = vmul.f32 %v325_v29, %v196_v52  ;;  %v223_v63 = vmul.f32 %v331_v59, %v454_v31  ;;  %vm229_vm2 = vweird.f32 %v331_v59  ;;  %vm240_vm3 = vmor %vm238_vm0, %vm239_vm15 }
 0x199   :  { %268 = vst.msk [vmem:[%s513_s5 + $0x10] sm:$0xff] %vm108_vm1, %v262_v55  ;;  %v217_v42 = vmul.f32 %v327_v32, %v216_v56  ;;  %v234_v61 = vmul.f32 %v329_v50, %v233_v58  ;;  %vm230_vm5 = vmor %vm228_vm4, %vm229_vm2 }
 0x19a   :  { %266 = vst.msk [vmem:[%s513_s5] sm:$0xff] %vm108_vm1, %v260_v41  ;;  %v201_v0 = vsel %vm200_vm12, %v325_v29, %v197_v60  ;;  %v224_v4 = vmul.f32 %v331_v59, %v223_v63 }
 0x19b   :  { %v243_v1 = vmul.f32 %v201_v0, %v424_v54  ;;  %v221_v2 = vsel %vm220_vm14, %v327_v32, %v217_v42  ;;  %v235_v3 = vmul.f32 0.5, %v234_v61 }
 0x19c   :  { %v245_v5 = vmul.f32 %v221_v2, %v422_v53  ;;  %v225_v8 = vmul.f32 0.5, %v224_v4 }
 0x19d   :  { %v252_v6 = vmul.f32 %v460_v35, %v243_v1  ;;  %v236_v7 = vsub.f32 1.5, %v235_v3 }
 0x19e   :  { %v254_v9 = vmul.f32 %v460_v35, %v245_v5  ;;  %v226_v12 = vsub.f32 1.5, %v225_v8 }
 0x19f   :  { %v261_v10 = vadd.f32 %v317_v40, %v252_v6  ;;  %v237_v11 = vmul.f32 %v329_v50, %v236_v7 }
 0x1a0   :  { %v263_v13 = vadd.f32 %v317_v40, %v254_v9  ;;  %v227_v54 = vmul.f32 %v331_v59, %v226_v12 }
 0x1a1   :  { %267 = vst.msk [vmem:[%s513_s5 + $0x8] sm:$0xff] %vm108_vm1, %v261_v10  ;;  %v241_v53 = vsel %vm240_vm3, %v329_v50, %v237_v11 }
 0x1a2   :  { %269 = vst.msk [vmem:[%s513_s5 + $0x18] sm:$0xff] %vm108_vm1, %v263_v13  ;;  %v247_v14 = vmul.f32 %v241_v53, %v435_v62  ;;  %v231_v15 = vsel %vm230_vm5, %v331_v59, %v227_v54 }
 0x1a3   :  { %v246_v17 = vmul.f32 %v231_v15, %v430_v57 }
 0x1a4   :  { %v256_v16 = vmul.f32 %v460_v35, %v247_v14 }
 0x1a5   :  { %v255_v19 = vmul.f32 %v460_v35, %v246_v17 }
 0x1a6   :  { %v265_v18 = vadd.f32 %v317_v40, %v256_v16 }
 0x1a7   :  { %v264_v20 = vadd.f32 %v317_v40, %v255_v19 }
 0x1a8   :  { %271 = vst.msk [vmem:[%s513_s5 + $0x28] sm:$0xff] %vm108_vm1, %v265_v18 }
 0x1a9   :  { %270 = vst.msk [vmem:[%s513_s5 + $0x20] sm:$0xff] %vm108_vm1, %v264_v20 }

</bundles_post_ra>
